<compile_context>
chip_gen: v7x
topology: tpu7x:2x2x1
jax: 0.10.0
libtpu: 0.0.40
codegen_flags: <defaults>
</compile_context>

<pallas_src>
import functools

import jax
import jax.numpy as jnp
from jax.experimental import pallas as pl
from jax.experimental.pallas import tpu as pltpu


OUT_PAD = 128  # lane-dense padded output width (true width N+1, sliced in wrapper)


def multihead_kernel(x_ref, w1_ref, b1_ref, wout_ref, bout_ref, out_ref):
    """One batch tile, fully fused.

    x_ref    : [TB, D]            f32/bf16  (batch tile of flattened input)
    w1_ref   : [D, N*HID]         f32/bf16  (packed first-layer weights)
    b1_ref   : [1, N*HID]         f32
    wout_ref : [N*HID, OUT_PAD]   f32       (folded 2nd layer + split + mean)
    bout_ref : [1, OUT_PAD]       f32
    out_ref  : [TB, OUT_PAD]      f32       (cols 0..N-1 synth, col N real-mean)
    """
    x = x_ref[...]                                                   # [TB, D]
    h = jnp.dot(x, w1_ref[...], preferred_element_type=jnp.float32)  # [TB, N*HID]
    h = jnp.maximum(h + b1_ref[...], 0.0)
    out_ref[...] = (
        jnp.dot(h, wout_ref[...], preferred_element_type=jnp.float32)
        + bout_ref[...]
    )


def pack_params(w1, b1, w2, b2, compute_dtype=jnp.float32):
    """One-time, wrapper-side weight packing (pure layout work, math-exact).

    Call ONCE per weight set and reuse the result across forward calls —
    this keeps the transpose / scatter / packed-weight HBM write out of the
    per-call path (review item: hoist/cache packing).
    """
    n, d, hid = w1.shape
    h_cat = n * hid
    assert n + 1 <= OUT_PAD, f"N+1={n + 1} must fit in padded output width {OUT_PAD}"

    # [N, D, HID] -> [D, N*HID], column index = i*HID + j (model-major).
    w1_cat = jnp.transpose(w1, (1, 0, 2)).reshape(d, h_cat).astype(compute_dtype)
    b1_cat = b1.reshape(1, h_cat).astype(jnp.float32)

    # Folded output projection: block-diagonal synth weights + scaled real column.
    w_out = jnp.zeros((h_cat, OUT_PAD), jnp.float32)
    for i in range(n):  # N is a small, compile-time constant; runs once per weight set
        w_out = w_out.at[i * hid:(i + 1) * hid, i].set(w2[i, :, 1].astype(jnp.float32))
    w_out = w_out.at[:, n].set(w2[:, :, 0].reshape(h_cat).astype(jnp.float32) / n)

    b_out = jnp.zeros((1, OUT_PAD), jnp.float32)
    b_out = b_out.at[0, :n].set(b2[:, 1].astype(jnp.float32))
    b_out = b_out.at[0, n].set(jnp.mean(b2[:, 0].astype(jnp.float32)))

    return w1_cat, b1_cat, w_out, b_out


def _round_up(v, m):
    return -(-v // m) * m


@functools.partial(jax.jit, static_argnames=("num_models",))
def modular_multihead_forward(x_nchw, w1_cat, b1_cat, w_out, b_out, *, num_models):
    """Flatten input and launch the batch-tiled fused kernel on packed weights."""
    b = x_nchw.shape[0]
    d, h_cat = w1_cat.shape

    x = x_nchw.reshape(b, -1).astype(w1_cat.dtype)  # matches x.view(B, -1)
    assert x.shape[1] == d, (x.shape, d)

    # Batch tiling:
    #  * sublane-aligned (multiple of 8), capped at 1024 rows (HBM-bound kernel:
    #    512-1024 row tiles reach ~85% of HBM BW vs ~63% at 256),
    #  * >=2 grid steps whenever B > 8 so the "parallel" axis shards across
    #    v7x's two TensorCores.
    if b <= 8:
        tb = 8
    else:
        tb = min(1024, _round_up(pl.cdiv(b, 2), 8))
    grid = (pl.cdiv(b, tb),)  # ragged last block handled by Pallas (no jnp.pad copy)

    # Explicit scoped-VMEM limit: footprint (double-buffered) + slack, floored
    # at 32 MiB, capped at 64 MiB (v7x physical).  Keeps v5e's 16 MiB default
    # from rejecting large tiles.
    in_itemsize = jnp.dtype(w1_cat.dtype).itemsize
    vmem_est = (
        2 * tb * d * in_itemsize          # x tile (double-buffered)
        + 2 * d * h_cat * in_itemsize     # packed w1 (constant index map)
        + 2 * h_cat * 4                   # b1
        + 2 * h_cat * OUT_PAD * 4         # folded out-proj
        + 2 * OUT_PAD * 4                 # b_out
        + 2 * tb * OUT_PAD * 4            # out tile (double-buffered)
    )
    vmem_limit = min(64 << 20, max(32 << 20, vmem_est + (8 << 20)))

    out_padded = pl.pallas_call(
        multihead_kernel,
        out_shape=jax.ShapeDtypeStruct((b, OUT_PAD), jnp.float32),
        grid=grid,
        in_specs=[
            pl.BlockSpec((tb, d), lambda i: (i, 0)),            # x: tiled over batch
            pl.BlockSpec((d, h_cat), lambda i: (0, 0)),          # packed w1: VMEM-resident
            pl.BlockSpec((1, h_cat), lambda i: (0, 0)),
            pl.BlockSpec((h_cat, OUT_PAD), lambda i: (0, 0)),    # folded out-proj
            pl.BlockSpec((1, OUT_PAD), lambda i: (0, 0)),
        ],
        out_specs=pl.BlockSpec((tb, OUT_PAD), lambda i: (i, 0)),  # lane-dense store
        compiler_params=pltpu.CompilerParams(
            dimension_semantics=("parallel",),   # batch axis -> both v7x TCs
            vmem_limit_bytes=vmem_limit,
        ),
    )(x, w1_cat, b1_cat, w_out, b_out)

    # Padded lane dim sliced back to the true N+1 columns (tiny vs. x traffic).
    return out_padded[:, :num_models + 1]


def modular_multihead_classifier(x_nchw, w1, b1, w2, b2, compute_dtype=jnp.float32):
    """Convenience one-shot API: packs weights then runs the forward.

    Prefer calling pack_params() once and modular_multihead_forward() per
    batch when weights are reused across calls.
    """
    packed = pack_params(w1, b1, w2, b2, compute_dtype)
    return modular_multihead_forward(x_nchw, *packed, num_models=w1.shape[0])


def reference_forward(x_nchw, w1, b1, w2, b2):
    """Pure-JAX reference mirroring the PyTorch module semantics."""
    b = x_nchw.shape[0]
    x = x_nchw.reshape(b, -1).astype(jnp.float32)
    n = w1.shape[0]
    synth_list, real_list = [], []
    for i in range(n):
        h = jnp.maximum(x @ w1[i] + b1[i], 0.0)
        out = h @ w2[i] + b2[i]          # [B, 2]
        real_list.append(out[:, 0:1])
        synth_list.append(out[:, 1:2])
    synth_cat = jnp.concatenate(synth_list, axis=1)
    real_mean = jnp.mean(jnp.concatenate(real_list, axis=1), axis=1, keepdims=True)
    return jnp.concatenate([synth_cat, real_mean], axis=1)


if __name__ == "__main__":
    # Small shapes: batch=2, channels=4, spatial=16x16, hidden=32, 4 sub-models.
    B, C, H, W = 2, 4, 16, 16
    D = C * H * W
    HID = 32
    N_MODELS = 4

    key = jax.random.PRNGKey(0)
    kx, kw1, kb1, kw2, kb2 = jax.random.split(key, 5)

    x = jax.random.normal(kx, (B, C, H, W), dtype=jnp.float32)
    w1 = jax.random.normal(kw1, (N_MODELS, D, HID), dtype=jnp.float32) * 0.02
    b1 = jax.random.normal(kb1, (N_MODELS, HID), dtype=jnp.float32) * 0.02
    w2 = jax.random.normal(kw2, (N_MODELS, HID, 2), dtype=jnp.float32) * 0.02
    b2 = jax.random.normal(kb2, (N_MODELS, 2), dtype=jnp.float32) * 0.02

    # Pack weights ONCE (hoisted out of the per-call forward), then run.
    packed = pack_params(w1, b1, w2, b2)  # default compute_dtype=f32 (exact numerics)
    out = modular_multihead_forward(x, *packed, num_models=N_MODELS)
    out = jax.block_until_ready(out)

    ref = reference_forward(x, w1, b1, w2, b2)
    assert out.shape == (B, N_MODELS + 1), out.shape
    # Tolerance accounts for the different (fused, 128-deep) f32 accumulation
    # order vs. the per-model reference — do not tighten.
    assert jnp.allclose(out, ref, atol=2e-5, rtol=1e-4), (out, ref)

    print("KERNEL_OK")
</pallas_src>

<mosaic_0001>
module attributes {stable_mosaic.version = 11 : i64} {
  func.func @multihead_kernel(%arg0: i32, %arg1: memref<8x1024xf32, #tpu.memory_space<vmem>>, %arg2: memref<1024x128xf32, #tpu.memory_space<vmem>>, %arg3: memref<1x128xf32, #tpu.memory_space<vmem>>, %arg4: memref<128x128xf32, #tpu.memory_space<vmem>>, %arg5: memref<1x128xf32, #tpu.memory_space<vmem>>, %arg6: memref<8x128xf32, #tpu.memory_space<vmem>>) attributes {dimension_semantics = [#tpu.dimension_semantics<parallel>], iteration_bounds = array<i64: 1>, scalar_prefetch = 0 : i64, scratch_operands = 0 : i64, tpu.core_type = #tpu.core_type<tc>, window_params = [{transform_indices = @transform_0, window_bounds = array<i64: 8, 1024>}, {pipeline_mode = #tpu.pipeline_mode<synchronous>, transform_indices = @transform_1, window_bounds = array<i64: 1024, 128>}, {pipeline_mode = #tpu.pipeline_mode<synchronous>, transform_indices = @transform_2, window_bounds = array<i64: 1, 128>}, {pipeline_mode = #tpu.pipeline_mode<synchronous>, transform_indices = @transform_3, window_bounds = array<i64: 128, 128>}, {pipeline_mode = #tpu.pipeline_mode<synchronous>, transform_indices = @transform_4, window_bounds = array<i64: 1, 128>}, {transform_indices = @transform_5, window_bounds = array<i64: 8, 128>}]} {
    %c0 = arith.constant 0 : index
    %c0_0 = arith.constant 0 : index
    %0 = vector.load %arg1[%c0, %c0_0] : memref<8x1024xf32, #tpu.memory_space<vmem>>, vector<8x1024xf32>
    %c0_1 = arith.constant 0 : index
    %c0_2 = arith.constant 0 : index
    %1 = vector.load %arg2[%c0_1, %c0_2] : memref<1024x128xf32, #tpu.memory_space<vmem>>, vector<1024x128xf32>
    %cst = arith.constant dense<0.000000e+00> : vector<8x128xf32>
    %2 = tpu.matmul %0, %1, %cst {dimension_numbers = #tpu.dot_dimension_numbers<[1], [0], [0], [1], [0, 0, 1, 1], [], []>} : vector<8x1024xf32>, vector<1024x128xf32>, vector<8x128xf32> -> vector<8x128xf32>
    %c0_3 = arith.constant 0 : index
    %c0_4 = arith.constant 0 : index
    %3 = vector.load %arg3[%c0_3, %c0_4] : memref<1x128xf32, #tpu.memory_space<vmem>>, vector<1x128xf32>
    %4 = vector.broadcast %3 : vector<1x128xf32> to vector<8x128xf32>
    %5 = arith.addf %2, %4 : vector<8x128xf32>
    %cst_5 = arith.constant 0.000000e+00 : f32
    %6 = vector.broadcast %cst_5 : f32 to vector<8x128xf32>
    %7 = arith.maximumf %5, %6 : vector<8x128xf32>
    %c0_6 = arith.constant 0 : index
    %c0_7 = arith.constant 0 : index
    %8 = vector.load %arg4[%c0_6, %c0_7] : memref<128x128xf32, #tpu.memory_space<vmem>>, vector<128x128xf32>
    %cst_8 = arith.constant dense<0.000000e+00> : vector<8x128xf32>
    %9 = tpu.matmul %7, %8, %cst_8 {dimension_numbers = #tpu.dot_dimension_numbers<[1], [0], [0], [1], [0, 0, 1, 1], [], []>} : vector<8x128xf32>, vector<128x128xf32>, vector<8x128xf32> -> vector<8x128xf32>
    %c0_9 = arith.constant 0 : index
    %c0_10 = arith.constant 0 : index
    %10 = vector.load %arg5[%c0_9, %c0_10] : memref<1x128xf32, #tpu.memory_space<vmem>>, vector<1x128xf32>
    %11 = vector.broadcast %10 : vector<1x128xf32> to vector<8x128xf32>
    %12 = arith.addf %9, %11 : vector<8x128xf32>
    %c0_11 = arith.constant 0 : index
    %c0_12 = arith.constant 0 : index
    %13 = vector.load %arg6[%c0_11, %c0_12] : memref<8x128xf32, #tpu.memory_space<vmem>>, vector<8x128xf32>
    tpu.vector_store %arg6[%c0_11, %c0_12], %12 {strides = array<i32>} : memref<8x128xf32, #tpu.memory_space<vmem>>, vector<8x128xf32>,
    return
  }
  func.func @transform_0(%arg0: i32) -> (i32, i32) {
    %c0_i32 = arith.constant 0 : i32
    %c0_i32_0 = arith.constant 0 : i32
    return %arg0, %c0_i32 : i32, i32
  }
  func.func @transform_1(%arg0: i32) -> (i32, i32) {
    %c0_i32 = arith.constant 0 : i32
    %c0_i32_0 = arith.constant 0 : i32
    %c0_i32_1 = arith.constant 0 : i32
    return %c0_i32, %c0_i32_0 : i32, i32
  }
  func.func @transform_2(%arg0: i32) -> (i32, i32) {
    %c0_i32 = arith.constant 0 : i32
    %c0_i32_0 = arith.constant 0 : i32
    %c0_i32_1 = arith.constant 0 : i32
    return %c0_i32, %c0_i32_0 : i32, i32
  }
  func.func @transform_3(%arg0: i32) -> (i32, i32) {
    %c0_i32 = arith.constant 0 : i32
    %c0_i32_0 = arith.constant 0 : i32
    %c0_i32_1 = arith.constant 0 : i32
    return %c0_i32, %c0_i32_0 : i32, i32
  }
  func.func @transform_4(%arg0: i32) -> (i32, i32) {
    %c0_i32 = arith.constant 0 : i32
    %c0_i32_0 = arith.constant 0 : i32
    %c0_i32_1 = arith.constant 0 : i32
    return %c0_i32, %c0_i32_0 : i32, i32
  }
  func.func @transform_5(%arg0: i32) -> (i32, i32) {
    %c0_i32 = arith.constant 0 : i32
    %c0_i32_0 = arith.constant 0 : i32
    return %arg0, %c0_i32 : i32, i32
  }
}

</mosaic_0001>

<bundles_post_ra>
// kernel: modular_multihead_forward.1
= control target key start
LH: loop header
LB: loop body
LE: loop exit
PB: predicated region body
PF: predicated region fallthrough
CT: control target
= control target key end

     0   :  { %10 = vsyncpa [#allocation3], 0  ;;  %s1226_s0 = inlined_call_operand.vmem [shape: f32[2,1024], index: 0, kind: input, shape index: {}]   ;;  %s1227_s1 = inlined_call_operand.hbm [shape: f32[1024,128], index: 1, kind: input, shape index: {}]   ;;  %s1228_s2 = inlined_call_operand.vmem [shape: f32[1,128], index: 2, kind: input, shape index: {}]   ;;  %s1229_s3 = inlined_call_operand.vmem [shape: f32[128,128], index: 3, kind: input, shape index: {}]   ;;  %s1230_s4 = inlined_call_operand.vmem [shape: f32[1,128], index: 4, kind: input, shape index: {}]   ;;  %s1231_s5 = inlined_call_operand.hbm [shape: f32[2,128], index: 5, kind: output, shape index: {}]  }
   0x1   :  { %11 = vsyncpa [#allocation4], 0  ;;  %s1074_s18 = smov [#allocation2]   ;;  %s1026_s22 = scalar_lea.hbm %s1227_s1, 16384 }
   0x2   :  { %s19_s19 = sshll.u32 %s1074_s18, 4  ;;  %p1027_p0 = scmp.ne.s32.totalorder %s1227_s1, %s1026_s22  ;;  %s20_s19 = int_to_ptr.vmem [resolvable:$true] %s19_s19 }
   0x3   :  { %p1030_p1 = scmp.lt.u32.totalorder %s1026_s22, %s1227_s1 }
   0x5   :  { %p1032_p2 = pnand %p1030_p1, %p1027_p0 }
   0x7   :  { %1035 = shalt.err (!%p1032_p2)
}
   0x8   :  { %s1036_s27 = scalar_lea.vmem %s20_s19, 16384  ;;  %p1041_p4 = scmp.lt.s32.totalorder %s20_s19, %s20_s19 }
   0x9   :  { %p1037_p3 = scmp.ne.s32.totalorder %s20_s19, %s1036_s27  ;;  %p1042_p5 = scmp.lt.s32.totalorder %s1036_s27, %s1036_s27 }
   0xb   :  { %p1043_p6 = por %p1042_p5, %p1041_p4 }
   0xd   :  { %p1044_p7 = pnand %p1043_p6, %p1037_p3 }
   0xf   :  { %1047 = shalt.err (!%p1044_p7)
}
  0x10   :  { %s1075_s28 = smov 128   ;;  %s1076_s29 = smov 8  }
  0x11   :  { %25 = dma.hbm_to_vmem [thread:$0]  %s1227_s1, 16384, %s20_s19, [#allocation3], %s1075_s28, %s1075_s28, %s1076_s29  }
  0x12   :  { %1070 = dma.done.wait [#allocation3], 16384  }
  0x13   :  { %1071 = vsyncadd [#allocation3], 4294950912  ;;  %v59_v0 = vld [vmem:[#allocation2 + $0x80] sm:$0xff]  ;;  %v60_v1 = vld [vmem:[#allocation2 + $0x88] sm:$0xff]  ;;  %v1077_v51 = vmov 1983009808   ;;  %v193_v53 = vlaneseq }
  0x14   :  { %v43_v2 = vld [vmem:[#allocation2] sm:$0xff]  ;;  %v852_v3 = vpack.c.bf16 %v60_v1, %v59_v0  ;;  %v44_v4 = vld [vmem:[#allocation2 + $0x8] sm:$0xff]  ;;  %v61_v11 = vld [vmem:[#allocation2 + $0x90] sm:$0xff]  ;;  %v191_v52 = vunpack.c.l.s4 %v1077_v51  ;;  %vm1079_vm0 = vmmov 0  }
  0x15   :  { %v91_v5 = vld [vmem:[#allocation2 + $0x180] sm:$0xff]  ;;  %v92_v6 = vld [vmem:[#allocation2 + $0x188] sm:$0xff]  ;;  %v854_v7 = vpack.c.bf16 %v44_v4, %v43_v2  ;;  %v62_v13 = vld [vmem:[#allocation2 + $0x98] sm:$0xff] }
  0x16   :  { %v884_v8 = vpack.c.bf16 %v92_v6, %v91_v5  ;;  %v75_v9 = vld [vmem:[#allocation2 + $0x100] sm:$0xff]  ;;  %v76_v10 = vld [vmem:[#allocation2 + $0x108] sm:$0xff]  ;;  %853 = vmatprep.subr.bf16.mxu0 %v852_v3  ;;  %v45_v14 = vld [vmem:[#allocation2 + $0x10] sm:$0xff]  ;;  %v856_v16 = vpack.c.bf16 %v62_v13, %v61_v11  ;;  %v192_v2 = vunpack.c.0.s8 %v191_v52  ;;  %v194_v3 = vshrl.u32 %v193_v53, 7 }
  0x17   :  { %v886_v12 = vpack.c.bf16 %v76_v10, %v75_v9  ;;  %v46_v15 = vld [vmem:[#allocation2 + $0x18] sm:$0xff]  ;;  %855 = vmatpush3.bf16.msra.mxu0 %v854_v7  ;;  %v93_v18 = vld [vmem:[#allocation2 + $0x190] sm:$0xff]  ;;  %v63_v23 = vld [vmem:[#allocation2 + $0xa0] sm:$0xff] }
  0x18   :  { %885 = vmatprep.subr.bf16.mxu1 %v884_v8  ;;  %v858_v17 = vpack.c.bf16 %v46_v15, %v45_v14  ;;  %v94_v19 = vld [vmem:[#allocation2 + $0x198] sm:$0xff]  ;;  %v77_v20 = vld [vmem:[#allocation2 + $0x110] sm:$0xff]  ;;  %v64_v24 = vld [vmem:[#allocation2 + $0xa8] sm:$0xff]  ;;  %857 = vmatprep.subr.bf16.mxu0 %v856_v16 }
  0x19   :  { %887 = vmatpush3.bf16.msra.mxu1 %v886_v12  ;;  %v888_v21 = vpack.c.bf16 %v94_v19, %v93_v18  ;;  %v78_v22 = vld [vmem:[#allocation2 + $0x118] sm:$0xff]  ;;  %v860_v26 = vpack.c.bf16 %v64_v24, %v63_v23  ;;  %v47_v27 = vld [vmem:[#allocation2 + $0x20] sm:$0xff]  ;;  %v48_v28 = vld [vmem:[#allocation2 + $0x28] sm:$0xff] }
  0x1a   :  { %v890_v25 = vpack.c.bf16 %v78_v22, %v77_v20  ;;  %v95_v29 = vld [vmem:[#allocation2 + $0x1a0] sm:$0xff]  ;;  %v96_v30 = vld [vmem:[#allocation2 + $0x1a8] sm:$0xff]  ;;  %v862_v33 = vpack.c.bf16 %v48_v28, %v47_v27  ;;  %v65_v35 = vld [vmem:[#allocation2 + $0xb0] sm:$0xff] }
  0x1b   :  { %889 = vmatprep.subr.bf16.mxu1 %v888_v21  ;;  %v79_v31 = vld [vmem:[#allocation2 + $0x120] sm:$0xff]  ;;  %v80_v32 = vld [vmem:[#allocation2 + $0x128] sm:$0xff]  ;;  %859 = vmatpush3.bf16.msra.mxu0 %v858_v17  ;;  %v892_v34 = vpack.c.bf16 %v96_v30, %v95_v29  ;;  %v66_v36 = vld [vmem:[#allocation2 + $0xb8] sm:$0xff]  ;;  %v1126_v21 = vsub.s32 %v192_v2, %v194_v3 }
  0x1c   :  { %v49_v37 = vld [vmem:[#allocation2 + $0x30] sm:$0xff]  ;;  %861 = vmatprep.subr.bf16.mxu0 %v860_v26  ;;  %v894_v38 = vpack.c.bf16 %v80_v32, %v79_v31  ;;  %v864_v39 = vpack.c.bf16 %v66_v36, %v65_v35  ;;  %v50_v40 = vld [vmem:[#allocation2 + $0x38] sm:$0xff]  ;;  %v67_v46 = vld [vmem:[#allocation2 + $0xc0] sm:$0xff] }
  0x1d   :  { %891 = vmatpush3.bf16.msra.mxu1 %v890_v25  ;;  %v97_v41 = vld [vmem:[#allocation2 + $0x1b0] sm:$0xff]  ;;  %v98_v42 = vld [vmem:[#allocation2 + $0x1b8] sm:$0xff]  ;;  %v68_v47 = vld [vmem:[#allocation2 + $0xc8] sm:$0xff]  ;;  %v866_v48 = vpack.c.bf16 %v50_v40, %v49_v37 }
  0x1e   :  { %893 = vmatprep.subr.bf16.mxu1 %v892_v34  ;;  %v896_v43 = vpack.c.bf16 %v98_v42, %v97_v41  ;;  %v81_v44 = vld [vmem:[#allocation2 + $0x130] sm:$0xff]  ;;  %v82_v45 = vld [vmem:[#allocation2 + $0x138] sm:$0xff]  ;;  %v99_v49 = vld [vmem:[#allocation2 + $0x1c0] sm:$0xff]  ;;  %v868_v55 = vpack.c.bf16 %v68_v47, %v67_v46 }
  0x1f   :  { %863 = vmatpush3.bf16.msra.mxu0 %v862_v33  ;;  %v100_v50 = vld [vmem:[#allocation2 + $0x1c8] sm:$0xff]  ;;  %v898_v54 = vpack.c.bf16 %v82_v45, %v81_v44  ;;  %v51_v56 = vld [vmem:[#allocation2 + $0x40] sm:$0xff]  ;;  %v69_v61 = vld [vmem:[#allocation2 + $0xd0] sm:$0xff] }
  0x20   :  { %865 = vmatprep.subr.bf16.mxu0 %v864_v39  ;;  %v52_v57 = vld [vmem:[#allocation2 + $0x48] sm:$0xff]  ;;  %v83_v58 = vld [vmem:[#allocation2 + $0x140] sm:$0xff]  ;;  %v900_v59 = vpack.c.bf16 %v100_v50, %v99_v49  ;;  %v70_v62 = vld [vmem:[#allocation2 + $0xd8] sm:$0xff] }
  0x21   :  { %895 = vmatpush3.bf16.msra.mxu1 %v894_v38  ;;  %v84_v60 = vld [vmem:[#allocation2 + $0x148] sm:$0xff]  ;;  %v101_v63 = vld [vmem:[#allocation2 + $0x1d0] sm:$0xff]  ;;  %v102_v0 = vld [vmem:[#allocation2 + $0x1d8] sm:$0xff]  ;;  %v870_v1 = vpack.c.bf16 %v52_v57, %v51_v56  ;;  %v872_v5 = vpack.c.bf16 %v70_v62, %v69_v61 }
  0x22   :  { %897 = vmatprep.subr.bf16.mxu1 %v896_v43  ;;  %v902_v4 = vpack.c.bf16 %v84_v60, %v83_v58  ;;  %v53_v6 = vld [vmem:[#allocation2 + $0x50] sm:$0xff]  ;;  %v54_v7 = vld [vmem:[#allocation2 + $0x58] sm:$0xff]  ;;  %v904_v9 = vpack.c.bf16 %v102_v0, %v101_v63  ;;  %v71_v11 = vld [vmem:[#allocation2 + $0xe0] sm:$0xff] }
  0x23   :  { %867 = vmatpush3.bf16.msra.mxu0 %v866_v48  ;;  %v85_v8 = vld [vmem:[#allocation2 + $0x150] sm:$0xff]  ;;  %v86_v10 = vld [vmem:[#allocation2 + $0x158] sm:$0xff]  ;;  %v72_v12 = vld [vmem:[#allocation2 + $0xe8] sm:$0xff]  ;;  %v874_v17 = vpack.c.bf16 %v54_v7, %v53_v6 }
  0x24   :  { %869 = vmatprep.subr.bf16.mxu0 %v868_v55  ;;  %v55_v13 = vld [vmem:[#allocation2 + $0x60] sm:$0xff]  ;;  %v56_v14 = vld [vmem:[#allocation2 + $0x68] sm:$0xff]  ;;  %v73_v20 = vld [vmem:[#allocation2 + $0xf0] sm:$0xff]  ;;  %v906_v22 = vpack.c.bf16 %v86_v10, %v85_v8  ;;  %v876_v23 = vpack.c.bf16 %v72_v12, %v71_v11 }
  0x25   :  { %899 = vmatpush3.bf16.msra.mxu1 %v898_v54  ;;  %v103_v15 = vld [vmem:[#allocation2 + $0x1e0] sm:$0xff]  ;;  %v104_v16 = vld [vmem:[#allocation2 + $0x1e8] sm:$0xff]  ;;  %v74_v24 = vld [vmem:[#allocation2 + $0xf8] sm:$0xff]  ;;  %v878_v30 = vpack.c.bf16 %v56_v14, %v55_v13 }
  0x26   :  { %901 = vmatprep.subr.bf16.mxu1 %v900_v59  ;;  %v87_v18 = vld [vmem:[#allocation2 + $0x160] sm:$0xff]  ;;  %v88_v19 = vld [vmem:[#allocation2 + $0x168] sm:$0xff]  ;;  %v908_v25 = vpack.c.bf16 %v104_v16, %v103_v15  ;;  %v105_v27 = vld [vmem:[#allocation2 + $0x1f0] sm:$0xff]  ;;  %v880_v35 = vpack.c.bf16 %v74_v24, %v73_v20 }
  0x27   :  { %871 = vmatpush3.bf16.msra.mxu0 %v870_v1  ;;  %v1014_v26 = vld [vmem:[%s1226_s0] ss:$16 sps:$4 sm:$0xff]   ;;  %v106_v28 = vld [vmem:[#allocation2 + $0x1f8] sm:$0xff]  ;;  %v1018_v32 = vld [vmem:[%s1226_s0 + $0x4] ss:$16 sps:$4 sm:$0xff]   ;;  %v910_v34 = vpack.c.bf16 %v88_v19, %v87_v18 }
  0x28   :  { %873 = vmatprep.subr.bf16.mxu0 %v872_v5  ;;  %v1016_v29 = vld [vmem:[%s1226_s0 + $0x20] ss:$16 sps:$4 sm:$0xff]   ;;  %v196_v31 = vrot.slane %v1014_v26, %v1126_v21  ;;  %v1019_v33 = vld [vmem:[%s1226_s0 + $0x24] ss:$16 sps:$4 sm:$0xff]   ;;  %v58_v37 = vld [vmem:[#allocation2 + $0x78] sm:$0xff]  ;;  %v912_v40 = vpack.c.bf16 %v106_v28, %v105_v27  ;;  %v203_v44 = vrot.slane %v1018_v32, %v1126_v21 }
  0x29   :  { %903 = vmatpush3.bf16.msra.mxu1 %v902_v4  ;;  %v57_v36 = vld [vmem:[#allocation2 + $0x70] sm:$0xff]  ;;  %v210_v39 = vrot.slane %v1016_v29, %v1126_v21  ;;  %v90_v41 = vld [vmem:[#allocation2 + $0x178] sm:$0xff]  ;;  %v123_v42 = vld [vmem:[#allocation2 + $0x280] sm:$0xff]  ;;  %v217_v45 = vrot.slane %v1019_v33, %v1126_v21 }
  0x2a   :  { %905 = vmatprep.subr.bf16.mxu1 %v904_v9  ;;  %v89_v38 = vld [vmem:[#allocation2 + $0x170] sm:$0xff]  ;;  %v124_v43 = vld [vmem:[#allocation2 + $0x288] sm:$0xff]  ;;  %v155_v47 = vld [vmem:[#allocation2 + $0x380] sm:$0xff]  ;;  %v882_v49 = vpack.c.bf16 %v58_v37, %v57_v36 }
  0x2b   :  { %875 = vmatpush3.bf16.msra.mxu0 %v874_v17  ;;  %v219_v46 = vcombine.high %v196_v31, %v210_v39  ;;  %v156_v48 = vld [vmem:[#allocation2 + $0x388] sm:$0xff]  ;;  %v221_v50 = vcombine.high %v203_v44, %v217_v45  ;;  %v914_v51 = vpack.c.bf16 %v90_v41, %v89_v38  ;;  %v916_v52 = vpack.c.bf16 %v124_v43, %v123_v42  ;;  %v107_v53 = vld [vmem:[#allocation2 + $0x200] sm:$0xff]  ;;  %v125_v58 = vld [vmem:[#allocation2 + $0x290] sm:$0xff] }
  0x2c   :  { %877 = vmatprep.subr.bf16.mxu0 %v876_v23  ;;  %v108_v54 = vld [vmem:[#allocation2 + $0x208] sm:$0xff]  ;;  %v139_v55 = vld [vmem:[#allocation2 + $0x300] sm:$0xff]  ;;  %v948_v56 = vpack.c.bf16 %v156_v48, %v155_v47  ;;  %v126_v59 = vld [vmem:[#allocation2 + $0x298] sm:$0xff]  ;;  %v218_v60 = vcombine.low %v196_v31, %v210_v39  ;;  %v220_v0 = vcombine.low %v203_v44, %v217_v45 }
  0x2d   :  { %907 = vmatpush3.bf16.msra.mxu1 %v906_v22  ;;  %330 = vmatprep.mubr.f32.mxu0 %v219_v46  ;;  %v140_v57 = vld [vmem:[#allocation2 + $0x308] sm:$0xff]  ;;  %v157_v61 = vld [vmem:[#allocation2 + $0x390] sm:$0xff]  ;;  %v158_v62 = vld [vmem:[#allocation2 + $0x398] sm:$0xff]  ;;  %v918_v63 = vpack.c.bf16 %v108_v54, %v107_v53  ;;  %v920_v2 = vpack.c.bf16 %v126_v59, %v125_v58 }
  0x2e   :  { %909 = vmatprep.subr.bf16.mxu1 %v908_v25  ;;  %400 = vmatprep.mubr.f32.mxu1 %v221_v50  ;;  %v950_v1 = vpack.c.bf16 %v140_v57, %v139_v55  ;;  %v109_v3 = vld [vmem:[#allocation2 + $0x210] sm:$0xff]  ;;  %v110_v4 = vld [vmem:[#allocation2 + $0x218] sm:$0xff]  ;;  %v952_v6 = vpack.c.bf16 %v158_v62, %v157_v61  ;;  %v127_v8 = vld [vmem:[#allocation2 + $0x2a0] sm:$0xff] }
  0x2f   :  { %879 = vmatpush3.bf16.msra.mxu0 %v878_v30  ;;  %v141_v5 = vld [vmem:[#allocation2 + $0x310] sm:$0xff]  ;;  %v142_v7 = vld [vmem:[#allocation2 + $0x318] sm:$0xff]  ;;  %v128_v9 = vld [vmem:[#allocation2 + $0x2a8] sm:$0xff]  ;;  %v922_v12 = vpack.c.bf16 %v110_v4, %v109_v3 }
  0x30   :  { %881 = vmatprep.subr.bf16.mxu0 %v880_v35  ;;  %v159_v10 = vld [vmem:[#allocation2 + $0x3a0] sm:$0xff]  ;;  %v160_v11 = vld [vmem:[#allocation2 + $0x3a8] sm:$0xff]  ;;  %v954_v13 = vpack.c.bf16 %v142_v7, %v141_v5  ;;  %v924_v14 = vpack.c.bf16 %v128_v9, %v127_v8  ;;  %v129_v20 = vld [vmem:[#allocation2 + $0x2b0] sm:$0xff] }
  0x31   :  { %911 = vmatpush3.bf16.msra.mxu1 %v910_v34  ;;  %v111_v15 = vld [vmem:[#allocation2 + $0x220] sm:$0xff]  ;;  %v112_v16 = vld [vmem:[#allocation2 + $0x228] sm:$0xff]  ;;  %v956_v18 = vpack.c.bf16 %v160_v11, %v159_v10  ;;  %v130_v22 = vld [vmem:[#allocation2 + $0x2b8] sm:$0xff] }
  0x32   :  { %913 = vmatprep.subr.bf16.mxu1 %v912_v40  ;;  %v143_v17 = vld [vmem:[#allocation2 + $0x320] sm:$0xff]  ;;  %v144_v19 = vld [vmem:[#allocation2 + $0x328] sm:$0xff]  ;;  %v161_v23 = vld [vmem:[#allocation2 + $0x3b0] sm:$0xff]  ;;  %v926_v25 = vpack.c.bf16 %v112_v16, %v111_v15  ;;  %v928_v27 = vpack.c.bf16 %v130_v22, %v129_v20 }
  0x33   :  { %883 = vmatpush3.bf16.msra.mxu0 %v882_v49  ;;  %v162_v24 = vld [vmem:[#allocation2 + $0x3b8] sm:$0xff]  ;;  %v958_v26 = vpack.c.bf16 %v144_v19, %v143_v17  ;;  %v113_v28 = vld [vmem:[#allocation2 + $0x230] sm:$0xff]  ;;  %v131_v33 = vld [vmem:[#allocation2 + $0x2c0] sm:$0xff] }
  0x34   :  { %917 = vmatprep.subr.bf16.mxu0 %v916_v52  ;;  %v114_v29 = vld [vmem:[#allocation2 + $0x238] sm:$0xff]  ;;  %v145_v30 = vld [vmem:[#allocation2 + $0x330] sm:$0xff]  ;;  %v960_v31 = vpack.c.bf16 %v162_v24, %v161_v23  ;;  %v132_v34 = vld [vmem:[#allocation2 + $0x2c8] sm:$0xff] }
  0x35   :  { %915 = vmatpush3.bf16.msra.mxu1 %v914_v51  ;;  %v146_v32 = vld [vmem:[#allocation2 + $0x338] sm:$0xff]  ;;  %v115_v35 = vld [vmem:[#allocation2 + $0x240] sm:$0xff]  ;;  %v116_v36 = vld [vmem:[#allocation2 + $0x248] sm:$0xff]  ;;  %v930_v40 = vpack.c.bf16 %v114_v29, %v113_v28  ;;  %v932_v45 = vpack.c.bf16 %v132_v34, %v131_v33  ;;  %v1078_v34 = vmov 0.0|0.0  }
  0x36   :  { %949 = vmatprep.subr.bf16.mxu1 %v948_v56  ;;  %331 = vmatmul.mubr.f32.vlgmr.msra.gmra.mrb[0].mxu0 %v218_v60  ;;  %v163_v37 = vld [vmem:[#allocation2 + $0x3c0] sm:$0xff]  ;;  %v164_v38 = vld [vmem:[#allocation2 + $0x3c8] sm:$0xff]  ;;  %v133_v42 = vld [vmem:[#allocation2 + $0x2d0] sm:$0xff]  ;;  %v962_v44 = vpack.c.bf16 %v146_v32, %v145_v30  ;;  %v934_v53 = vpack.c.bf16 %v116_v36, %v115_v35 }
  0x37   :  { %919 = vmatpush3.bf16.msra.mxu0 %v918_v63  ;;  %v147_v39 = vld [vmem:[#allocation2 + $0x340] sm:$0xff]  ;;  %v148_v41 = vld [vmem:[#allocation2 + $0x348] sm:$0xff]  ;;  %v134_v43 = vld [vmem:[#allocation2 + $0x2d8] sm:$0xff]  ;;  %v964_v48 = vpack.c.bf16 %v164_v38, %v163_v37 }
  0x38   :  { %401 = vmatmul.mubr.f32.vlgmr.msra.gmra.mrb[0].mxu1 %v220_v0  ;;  %921 = vmatprep.subr.bf16.mxu0 %v920_v2  ;;  %v165_v46 = vld [vmem:[#allocation2 + $0x3d0] sm:$0xff]  ;;  %v166_v47 = vld [vmem:[#allocation2 + $0x3d8] sm:$0xff]  ;;  %v966_v54 = vpack.c.bf16 %v148_v41, %v147_v39  ;;  %v936_v55 = vpack.c.bf16 %v134_v43, %v133_v42  ;;  %v136_v2 = vld [vmem:[#allocation2 + $0x2e8] sm:$0xff] }
  0x39   :  { %951 = vmatpush3.bf16.msra.mxu1 %v950_v1  ;;  %v1020_v49 = vld [vmem:[%s1226_s0 + $0x8] ss:$16 sps:$4 sm:$0xff]   ;;  %v1024_v51 = vld [vmem:[%s1226_s0 + $0xc] ss:$16 sps:$4 sm:$0xff]   ;;  %v117_v57 = vld [vmem:[#allocation2 + $0x250] sm:$0xff]  ;;  %v968_v63 = vpack.c.bf16 %v166_v47, %v165_v46 }
  0x3a   :  { %953 = vmatprep.subr.bf16.mxu1 %v952_v6  ;;  %v1022_v50 = vld [vmem:[%s1226_s0 + $0x28] ss:$16 sps:$4 sm:$0xff]   ;;  %v1025_v52 = vld [vmem:[%s1226_s0 + $0x2c] ss:$16 sps:$4 sm:$0xff]   ;;  %v232_v56 = vrot.slane %v1020_v49, %v1126_v21  ;;  %v149_v59 = vld [vmem:[#allocation2 + $0x350] sm:$0xff]  ;;  %v239_v61 = vrot.slane %v1024_v51, %v1126_v21 }
  0x3b   :  { %923 = vmatpush3.bf16.msra.mxu0 %v922_v12  ;;  %v118_v58 = vld [vmem:[#allocation2 + $0x258] sm:$0xff]  ;;  %v246_v60 = vrot.slane %v1022_v50, %v1126_v21  ;;  %v253_v62 = vrot.slane %v1025_v52, %v1126_v21  ;;  %v135_v1 = vld [vmem:[#allocation2 + $0x2e0] sm:$0xff]  ;;  %v168_v4 = vld [vmem:[#allocation2 + $0x3e8] sm:$0xff] }
  0x3c   :  { %925 = vmatprep.subr.bf16.mxu0 %v924_v14  ;;  %v150_v0 = vld [vmem:[#allocation2 + $0x358] sm:$0xff]  ;;  %v167_v3 = vld [vmem:[#allocation2 + $0x3e0] sm:$0xff]  ;;  %v938_v7 = vpack.c.bf16 %v118_v58, %v117_v57  ;;  %v940_v9 = vpack.c.bf16 %v136_v2, %v135_v1  ;;  %v120_v11 = vld [vmem:[#allocation2 + $0x268] sm:$0xff] }
  0x3d   :  { %955 = vmatpush3.bf16.msra.mxu1 %v954_v13  ;;  %v255_v5 = vcombine.high %v232_v56, %v246_v60  ;;  %v257_v6 = vcombine.high %v239_v61, %v253_v62  ;;  %v970_v8 = vpack.c.bf16 %v150_v0, %v149_v59  ;;  %v119_v10 = vld [vmem:[#allocation2 + $0x260] sm:$0xff]  ;;  %v972_v21 = vpack.c.bf16 %v168_v4, %v167_v3  ;;  %v152_v13 = vld [vmem:[#allocation2 + $0x368] sm:$0xff]  ;;  %v137_v14 = vld [vmem:[#allocation2 + $0x2f0] sm:$0xff] }
  0x3e   :  { %957 = vmatprep.subr.bf16.mxu1 %v956_v18  ;;  %v151_v12 = vld [vmem:[#allocation2 + $0x360] sm:$0xff]  ;;  %v138_v15 = vld [vmem:[#allocation2 + $0x2f8] sm:$0xff]  ;;  %v169_v16 = vld [vmem:[#allocation2 + $0x3f0] sm:$0xff]  ;;  %v942_v18 = vpack.c.bf16 %v120_v11, %v119_v10  ;;  %v254_v29 = vcombine.low %v232_v56, %v246_v60  ;;  %v256_v30 = vcombine.low %v239_v61, %v253_v62  ;;  %v1080_v56 = vmov 0.0  }
  0x3f   :  { %927 = vmatpush3.bf16.msra.mxu0 %v926_v25  ;;  %470 = vmatprep.mubr.f32.mxu0 %v255_v5  ;;  %v170_v17 = vld [vmem:[#allocation2 + $0x3f8] sm:$0xff]  ;;  %v974_v19 = vpack.c.bf16 %v152_v13, %v151_v12  ;;  %v944_v20 = vpack.c.bf16 %v138_v15, %v137_v14  ;;  %v121_v22 = vld [vmem:[#allocation2 + $0x270] sm:$0xff]  ;;  %v548_v32 = vld [vmem:[%s1229_s3 + $0x8] sm:$0xff] }
  0x40   :  { %929 = vmatprep.subr.bf16.mxu0 %v928_v27  ;;  %540 = vmatprep.mubr.f32.mxu1 %v257_v6  ;;  %v122_v23 = vld [vmem:[#allocation2 + $0x278] sm:$0xff]  ;;  %v976_v24 = vpack.c.bf16 %v170_v17, %v169_v16  ;;  %v153_v25 = vld [vmem:[#allocation2 + $0x370] sm:$0xff]  ;;  %v551_v38 = vld [vmem:[%s1229_s3 + $0x20] sm:$0xff] }
  0x41   :  { %959 = vmatpush3.bf16.msra.mxu1 %v958_v26  ;;  %v154_v26 = vld [vmem:[#allocation2 + $0x378] sm:$0xff]  ;;  %v946_v27 = vpack.c.bf16 %v122_v23, %v121_v22  ;;  %v549_v33 = vld [vmem:[%s1229_s3 + $0x10] sm:$0xff]  ;;  %v552_v39 = vld [vmem:[%s1229_s3 + $0x28] sm:$0xff] }
  0x42   :  { %961 = vmatprep.subr.bf16.mxu1 %v960_v31  ;;  %v978_v28 = vpack.c.bf16 %v154_v26, %v153_v25  ;;  %v547_v31 = vld [vmem:[%s1229_s3] sm:$0xff]  ;;  %v550_v36 = vld [vmem:[%s1229_s3 + $0x18] sm:$0xff]  ;;  %v553_v41 = vld [vmem:[%s1229_s3 + $0x30] sm:$0xff] }
  0x43   :  { %931 = vmatpush3.bf16.msra.mxu0 %v930_v40  ;;  %v981_v35 = vpack.c.bf16 %v548_v32, %v547_v31  ;;  %v984_v37 = vpack.c.bf16 %v550_v36, %v549_v33  ;;  %v987_v40 = vpack.c.bf16 %v552_v39, %v551_v38  ;;  %v554_v42 = vld [vmem:[%s1229_s3 + $0x38] sm:$0xff]  ;;  %v557_v47 = vld [vmem:[%s1229_s3 + $0x50] sm:$0xff]  ;;  %v559_v50 = vld [vmem:[%s1229_s3 + $0x60] sm:$0xff] }
  0x44   :  { %933 = vmatprep.subr.bf16.mxu0 %v932_v45  ;;  %v990_v43 = vpack.c.bf16 %v554_v42, %v553_v41  ;;  %v556_v45 = vld [vmem:[%s1229_s3 + $0x48] sm:$0xff]  ;;  %v658_v58 = vld [vmem:[%s1228_s2] ss:$0 sm:$0xff] }
  0x45   :  { %963 = vmatpush3.bf16.msra.mxu1 %v962_v44  ;;  %v555_v44 = vld [vmem:[%s1229_s3 + $0x40] sm:$0xff]  ;;  %v560_v51 = vld [vmem:[%s1229_s3 + $0x68] sm:$0xff] }
  0x46   :  { %965 = vmatprep.subr.bf16.mxu1 %v964_v48  ;;  %v993_v46 = vpack.c.bf16 %v556_v45, %v555_v44  ;;  %v558_v48 = vld [vmem:[%s1229_s3 + $0x58] sm:$0xff]  ;;  %v999_v52 = vpack.c.bf16 %v560_v51, %v559_v50  ;;  %v659_v11 = vld [vmem:[%s1230_s4] ss:$0 sm:$0xff] }
  0x47   :  { %935 = vmatpush3.bf16.msra.mxu0 %v934_v53  ;;  %v996_v49 = vpack.c.bf16 %v558_v48, %v557_v47  ;;  %v561_v53 = vld [vmem:[%s1229_s3 + $0x70] sm:$0xff] }
  0x48   :  { %937 = vmatprep.subr.bf16.mxu0 %v936_v55 }
  0x49   :  { %967 = vmatpush3.bf16.msra.mxu1 %v966_v54  ;;  %v562_v54 = vld [vmem:[%s1229_s3 + $0x78] sm:$0xff] }
  0x4a   :  { %969 = vmatprep.subr.bf16.mxu1 %v968_v63  ;;  %v1002_v55 = vpack.c.bf16 %v562_v54, %v561_v53 }
  0x4b   :  { %939 = vmatpush3.bf16.msra.mxu0 %v938_v7 }
  0x4c   :  { %941 = vmatprep.subr.bf16.mxu0 %v940_v9 }
  0x4d   :  { %971 = vmatpush3.bf16.msra.mxu1 %v970_v8 }
  0x4e   :  { %973 = vmatprep.subr.bf16.mxu1 %v972_v21 }
  0x4f   :  { %943 = vmatpush3.bf16.msra.mxu0 %v942_v18 }
  0x50   :  { %945 = vmatprep.subr.bf16.mxu0 %v944_v20 }
  0x51   :  { %975 = vmatpush3.bf16.msra.mxu1 %v974_v19 }
  0x52   :  { %977 = vmatprep.subr.bf16.mxu1 %v976_v24 }
  0x53   :  { %947 = vmatpush3.bf16.msra.mxu0 %v946_v27 }
  0x54   :  { %980 = vmatprep.subr.bf16.mxu0 %v1078_v34 }
  0x55   :  { %979 = vmatpush3.bf16.msra.mxu1 %v978_v28 }
  0x56   :  { %471 = vmatmul.mubr.f32.vlgmr.msra.gmra.mrb[2].mxu0 %v254_v29 }
  0x57   :  { %982 = vmatpush3.bf16.msra.mxu0 %v981_v35  ;;  %849 = vmatprep.mubr.msk.f32.mxu0 %vm1079_vm0, %v1080_v56 }
  0x58   :  { %541 = vmatmul.mubr.f32.vlgmr.msra.gmra.mrb[2].mxu1 %v256_v30  ;;  %983 = vmatprep.subr.bf16.mxu0 %v1078_v34 }
  0x5b   :  { %985 = vmatpush3.bf16.msra.mxu0 %v984_v37 }
  0x5c   :  { %986 = vmatprep.subr.bf16.mxu0 %v1078_v34 }
  0x5f   :  { %988 = vmatpush3.bf16.msra.mxu0 %v987_v40 }
  0x60   :  { %989 = vmatprep.subr.bf16.mxu0 %v1078_v34 }
  0x63   :  { %991 = vmatpush3.bf16.msra.mxu0 %v990_v43 }
  0x64   :  { %992 = vmatprep.subr.bf16.mxu0 %v1078_v34 }
  0x67   :  { %994 = vmatpush3.bf16.msra.mxu0 %v993_v46 }
  0x68   :  { %995 = vmatprep.subr.bf16.mxu0 %v1078_v34 }
  0x6b   :  { %997 = vmatpush3.bf16.msra.mxu0 %v996_v49 }
  0x6c   :  { %998 = vmatprep.subr.bf16.mxu0 %v1078_v34 }
  0x6f   :  { %1000 = vmatpush3.bf16.msra.mxu0 %v999_v52 }
  0x70   :  { %1001 = vmatprep.subr.bf16.mxu0 %v1078_v34 }
  0x73   :  { %1003 = vmatpush3.bf16.msra.mxu0 %v1002_v55 }
 0x109   :  { %v692_v57 = vpop.f32.mrb[0].mxu0 }
 0x10a   :  { %v693_v59 = vpop.f32.mrb[1].mxu0 }
 0x10b   :  { %v727_v60 = vpop.f32.mrb[0].mxu1  ;;  %v694_v61 = vadd.f32 %v693_v59, %v692_v57 }
 0x10c   :  { %v728_v62 = vpop.f32.mrb[1].mxu1 }
 0x10d   :  { %v729_v63 = vadd.f32 %v728_v62, %v727_v60  ;;  %v333_v0 = vadd.f32 %v694_v61, %v658_v58 }
 0x10f   :  { %v403_v1 = vadd.f32 %v729_v63, %v333_v0 }
 0x129   :  { %v762_v2 = vpop.f32.mrb[2].mxu0 }
 0x12a   :  { %v763_v3 = vpop.f32.mrb[3].mxu0 }
 0x12b   :  { %v797_v4 = vpop.f32.mrb[2].mxu1  ;;  %v764_v5 = vadd.f32 %v763_v3, %v762_v2 }
 0x12c   :  { %v798_v6 = vpop.f32.mrb[3].mxu1 }
 0x12d   :  { %v799_v7 = vadd.f32 %v798_v6, %v797_v4  ;;  %v473_v8 = vadd.f32 %v764_v5, %v403_v1 }
 0x12f   :  { %v543_v9 = vadd.f32 %v799_v7, %v473_v8 }
 0x131   :  { %v546_v10 = vmax.f32 %v543_v9, 0.0 }
 0x133   :  { %850 = vmatmul.mubr.f32.vlgmr.msra.gmra.mrb[4].mxu0 %v546_v10 }
 0x206   :  { %v636_v12 = vpop.f32.mrb[4].mxu0 }
 0x207   :  { %v637_v21 = vadd.f32 %v659_v11, %v636_v12  ;;  %v851_v13 = vpop.f32.mrb[5].mxu0 }
 0x209   :  { %640 = vst [vmem:[#allocation5] sm:$0xff] %v637_v21 }
 0x20a   :  { %645 = vsyncadd [#allocation4], 96  ;;  %s1081_s2 = smov [#allocation5]  }
 0x20b   :  { %s646_s29 = sshll.u32 %s1081_s2, 4  ;;  %s647_s29 = int_to_ptr.vmem [resolvable:$true] %s646_s29 }
 0x20c   :  { %s1048_s30 = scalar_lea.vmem %s647_s29, 32  ;;  %s1052_s6 = scalar_lea.vmem %s647_s29, 128 }
 0x20d   :  { %p1049_p8 = scmp.ne.s32.totalorder %s647_s29, %s1048_s30  ;;  %p1053_p9 = scmp.lt.s32.totalorder %s647_s29, %s647_s29 }
 0x20e   :  { %p1054_p10 = scmp.lt.s32.totalorder %s1052_s6, %s1048_s30 }
 0x210   :  { %p1055_p11 = por %p1054_p10, %p1053_p9 }
 0x212   :  { %p1056_p12 = pnand %p1055_p11, %p1049_p8 }
 0x214   :  { %1059 = shalt.err (!%p1056_p12)
}
 0x215   :  { %s1060_s4 = scalar_lea.hbm %s1231_s5, 32 }
 0x216   :  { %p1061_p13 = scmp.ne.s32.totalorder %s1231_s5, %s1060_s4  ;;  %p1064_p0 = scmp.lt.u32.totalorder %s1060_s4, %s1231_s5 }
 0x218   :  { %p1066_p1 = pnand %p1064_p0, %p1061_p13 }
 0x21a   :  { %1069 = shalt.err (!%p1066_p1)
}
 0x21b   :  { %s1082_s12 = smov 32   ;;  %s1083_s13 = smov 2  }
 0x21c   :  { %652 = dma.vmem_to_hbm [thread:$0]  %s647_s29, 32, %s1231_s5, [#allocation4], %s1082_s12, %s1082_s12, %s1083_s13  }
 0x21d   :  { %1072 = dma.done.wait [#allocation4], 128  }
 0x21e   :  { %1073 = vsyncadd [#allocation4], 4294967168 }
 0x21f   :  { %656 = vsyncpa [#allocation3], 1 }
 0x220   :  { %657 = vsyncpa [#allocation4], 1 }

</bundles_post_ra>
